<compile_context>
chip_gen: v5e
topology: v5e:2x2
jax: 0.10.0
libtpu: 0.0.40
codegen_flags: <defaults>
</compile_context>

<pallas_src>
import jax
import jax.numpy as jnp
from jax.experimental import pallas as pl
from jax.experimental.pallas import tpu as pltpu

# Problem sizes (CartPole-like, consistent with the original DQN script).
STATE_DIM = 4            # env.observation_space.shape[0]
HIDDEN = 30              # fc1 output features (logical)
ACTION_DIM = 2           # env.action_space.n (logical)

K_PAD = 8                # fc1 contraction padded 4 -> 8 (row STATE_DIM = constant 1 / bias)
HPAD = 128               # hidden padded 30 -> 128 (full lane width / native MXU tile)
APAD = 8                 # action rows padded 2 -> 8 (full sublane height)
ONE_ROW = HIDDEN         # padded hidden unit that carries a constant 1 (folds b2 into fc2)

LANE = 128
SINGLE_STEP_MAX = 2048   # up to this many rows: whole batch in one grid step
MULTI_STEP_BLOCK = 512   # rows per grid step beyond that

BATCH = 256              # demo batch (DQN learning-path minibatch sized)


def _round_up(n, m):
    return ((n + m - 1) // m) * m


def net_kernel(x_ref, w1_ref, w2_ref, o_ref):
    """Transposed layout: features/actions on sublanes, batch on lanes.

    x_ref : (K_PAD, TB)    rows 0..3 = state, row 4 = 1.0, rows 5..7 = 0
    w1_ref: (HPAD, K_PAD)  col STATE_DIM = b1 (plus 1.0 at row ONE_ROW)
    w2_ref: (APAD, HPAD)   col ONE_ROW = b2
    o_ref : (APAD, TB)     rows 0..1 = Q-values, rows 2..7 = 0
    """
    # fc1 (+ bias, via the constant-1 feature row) and ReLU, all on the MXU:
    # (HPAD, K_PAD) @ (K_PAD, TB) with f32 accumulation.
    h = jnp.maximum(
        jnp.dot(w1_ref[...], x_ref[...], preferred_element_type=jnp.float32),
        0.0,
    )                                                     # (HPAD, TB); row 30 == 1 for real cols
    # fc2 (+ bias via hidden row ONE_ROW) on the MXU: (APAD, HPAD) @ (HPAD, TB).
    # Lane-dense, unmasked store of the full (APAD, TB) tile.
    o_ref[...] = jnp.dot(
        w2_ref[...], h, preferred_element_type=jnp.float32
    ).astype(o_ref.dtype)


def pack_params(w1, b1, w2, b2):
    """Fold weights + biases into two small, zero-padded, MXU-friendly blocks.

    w1: (STATE_DIM, HIDDEN)  b1: (HIDDEN,)  w2: (HIDDEN, ACTION_DIM)  b2: (ACTION_DIM,)
    Returns:
      w1_t: (HPAD, K_PAD) -- w1_t[h, k] = w1[k, h]; col STATE_DIM = b1, and 1.0 at
                             (ONE_ROW, STATE_DIM) so hidden unit 30 is a constant 1.
      w2_t: (APAD, HPAD)  -- w2_t[a, h] = w2[h, a]; col ONE_ROW = b2.
    """
    w1_t = jnp.zeros((HPAD, K_PAD), jnp.float32)
    w1_t = w1_t.at[:HIDDEN, :STATE_DIM].set(w1.astype(jnp.float32).T)
    w1_t = w1_t.at[:HIDDEN, STATE_DIM].set(b1.astype(jnp.float32))
    w1_t = w1_t.at[ONE_ROW, STATE_DIM].set(1.0)           # constant-1 hidden unit

    w2_t = jnp.zeros((APAD, HPAD), jnp.float32)
    w2_t = w2_t.at[:ACTION_DIM, :HIDDEN].set(w2.astype(jnp.float32).T)
    w2_t = w2_t.at[:ACTION_DIM, ONE_ROW].set(b2.astype(jnp.float32))
    return w1_t, w2_t


def net_forward(x, w1_t, w2_t):
    """x: (B, STATE_DIM) f32 -> (B, ACTION_DIM) f32 (identical math to the nn.Module)."""
    B = x.shape[0]

    # One grid step whenever the whole batch fits comfortably (it always does for
    # DQN-sized minibatches); go multi-step with large blocks only for huge B.
    if B <= SINGLE_STEP_MAX:
        block_b = _round_up(B, LANE)
    else:
        block_b = MULTI_STEP_BLOCK
    num_blocks = -(-B // block_b)
    Bp = num_blocks * block_b

    # Layout plumbing (tiny): put the batch on the lane axis, append the
    # constant-1 feature row (fc1 bias), zero-pad features 4->8 and batch B->Bp.
    # Padded batch columns stay exactly 0 all the way through the kernel.
    x_t = jnp.zeros((K_PAD, Bp), jnp.float32)
    x_t = x_t.at[:STATE_DIM, :B].set(x.astype(jnp.float32).T)
    x_t = x_t.at[STATE_DIM, :B].set(1.0)

    flops = 2 * HPAD * K_PAD * Bp + 2 * APAD * HPAD * Bp
    bytes_accessed = 4 * (K_PAD * Bp + HPAD * K_PAD + APAD * HPAD + APAD * Bp)

    out_t = pl.pallas_call(
        net_kernel,
        out_shape=jax.ShapeDtypeStruct((APAD, Bp), jnp.float32),
        grid=(num_blocks,),
        in_specs=[
            pl.BlockSpec((K_PAD, block_b), lambda i: (0, i)),     # x tile (batch on lanes)
            pl.BlockSpec(memory_space=pltpu.MemorySpace.VMEM),    # fc1 block, whole-array resident
            pl.BlockSpec(memory_space=pltpu.MemorySpace.VMEM),    # fc2 block, whole-array resident
        ],
        out_specs=pl.BlockSpec((APAD, block_b), lambda i: (0, i)),
        compiler_params=pltpu.CompilerParams(
            # Only worth sharding across v7x's 2 TCs when there are multiple
            # big grid steps; a single small step runs on one core.
            dimension_semantics=(("parallel",) if num_blocks > 1 else ("arbitrary",)),
        ),
        cost_estimate=pl.CostEstimate(
            flops=flops, transcendentals=0, bytes_accessed=bytes_accessed),
    )(x_t, w1_t, w2_t)

    # (APAD, Bp) -> (B, ACTION_DIM). The padded action rows / batch columns are
    # exactly 0 and are dropped here; never argmax over the padded slab directly.
    return out_t[:ACTION_DIM, :B].T


def init_params(key):
    """Weights ~ Normal(0, 0.1) per the PyTorch module; biases use nn.Linear's
    default Uniform(-1/sqrt(fan_in), 1/sqrt(fan_in))."""
    k1, k2, k3, k4 = jax.random.split(key, 4)
    w1 = 0.1 * jax.random.normal(k1, (STATE_DIM, HIDDEN), jnp.float32)
    w2 = 0.1 * jax.random.normal(k2, (HIDDEN, ACTION_DIM), jnp.float32)
    bound1 = STATE_DIM ** -0.5
    bound2 = HIDDEN ** -0.5
    b1 = jax.random.uniform(k3, (HIDDEN,), jnp.float32, -bound1, bound1)
    b2 = jax.random.uniform(k4, (ACTION_DIM,), jnp.float32, -bound2, bound2)
    return w1, b1, w2, b2


if __name__ == "__main__":
    key = jax.random.PRNGKey(0)
    pkey, xkey = jax.random.split(key)
    w1, b1, w2, b2 = init_params(pkey)
    w1_t, w2_t = pack_params(w1, b1, w2, b2)

    x = jax.random.normal(xkey, (BATCH, STATE_DIM), jnp.float32)

    out = jax.block_until_ready(net_forward(x, w1_t, w2_t))

    # Pure-JAX reference of the same math (fc1 -> ReLU -> fc2 with biases).
    ref = jnp.maximum(x @ w1 + b1[None, :], 0.0) @ w2 + b2[None, :]
    assert out.shape == (BATCH, ACTION_DIM)
    assert jnp.allclose(out, ref, atol=1e-4, rtol=1e-4)

    print("KERNEL_OK")
</pallas_src>

<mosaic_0001>
module attributes {stable_mosaic.version = 11 : i64} {
  func.func @net_kernel(%arg0: i32, %arg1: memref<8x256xf32, #tpu.memory_space<vmem>>, %arg2: memref<128x8xf32, #tpu.memory_space<vmem>>, %arg3: memref<8x128xf32, #tpu.memory_space<vmem>>, %arg4: memref<8x256xf32, #tpu.memory_space<vmem>>) attributes {dimension_semantics = [#tpu.dimension_semantics<arbitrary>], iteration_bounds = array<i64: 1>, scalar_prefetch = 0 : i64, scratch_operands = 0 : i64, tpu.core_type = #tpu.core_type<tc>, window_params = [{transform_indices = @transform_0, window_bounds = array<i64: 8, 256>}, {pipeline_mode = #tpu.pipeline_mode<synchronous>, transform_indices = @transform_1, window_bounds = array<i64: 128, 8>}, {pipeline_mode = #tpu.pipeline_mode<synchronous>, transform_indices = @transform_2, window_bounds = array<i64: 8, 128>}, {transform_indices = @transform_3, window_bounds = array<i64: 8, 256>}]} {
    %c0 = arith.constant 0 : index
    %c0_0 = arith.constant 0 : index
    %0 = vector.load %arg2[%c0, %c0_0] : memref<128x8xf32, #tpu.memory_space<vmem>>, vector<128x8xf32>
    %c0_1 = arith.constant 0 : index
    %c0_2 = arith.constant 0 : index
    %1 = vector.load %arg1[%c0_1, %c0_2] : memref<8x256xf32, #tpu.memory_space<vmem>>, vector<8x256xf32>
    %cst = arith.constant dense<0.000000e+00> : vector<128x256xf32>
    %2 = tpu.matmul %0, %1, %cst {dimension_numbers = #tpu.dot_dimension_numbers<[1], [0], [0], [1], [0, 0, 1, 1], [], []>} : vector<128x8xf32>, vector<8x256xf32>, vector<128x256xf32> -> vector<128x256xf32>
    %cst_3 = arith.constant 0.000000e+00 : f32
    %3 = vector.broadcast %cst_3 : f32 to vector<128x256xf32>
    %4 = arith.maximumf %2, %3 : vector<128x256xf32>
    %c0_4 = arith.constant 0 : index
    %c0_5 = arith.constant 0 : index
    %5 = vector.load %arg3[%c0_4, %c0_5] : memref<8x128xf32, #tpu.memory_space<vmem>>, vector<8x128xf32>
    %cst_6 = arith.constant dense<0.000000e+00> : vector<8x256xf32>
    %6 = tpu.matmul %5, %4, %cst_6 {dimension_numbers = #tpu.dot_dimension_numbers<[1], [0], [0], [1], [0, 0, 1, 1], [], []>} : vector<8x128xf32>, vector<128x256xf32>, vector<8x256xf32> -> vector<8x256xf32>
    %c0_7 = arith.constant 0 : index
    %c0_8 = arith.constant 0 : index
    %7 = vector.load %arg4[%c0_7, %c0_8] : memref<8x256xf32, #tpu.memory_space<vmem>>, vector<8x256xf32>
    tpu.vector_store %arg4[%c0_7, %c0_8], %6 {strides = array<i32>} : memref<8x256xf32, #tpu.memory_space<vmem>>, vector<8x256xf32>,
    return
  }
  func.func @transform_0(%arg0: i32) -> (i32, i32) {
    %c0_i32 = arith.constant 0 : i32
    %c0_i32_0 = arith.constant 0 : i32
    return %c0_i32, %arg0 : i32, i32
  }
  func.func @transform_1(%arg0: i32) -> (i32, i32) {
    %c0_i32 = arith.constant 0 : i32
    %c0_i32_0 = arith.constant 0 : i32
    %c0_i32_1 = arith.constant 0 : i32
    return %c0_i32, %c0_i32_0 : i32, i32
  }
  func.func @transform_2(%arg0: i32) -> (i32, i32) {
    %c0_i32 = arith.constant 0 : i32
    %c0_i32_0 = arith.constant 0 : i32
    %c0_i32_1 = arith.constant 0 : i32
    return %c0_i32, %c0_i32_0 : i32, i32
  }
  func.func @transform_3(%arg0: i32) -> (i32, i32) {
    %c0_i32 = arith.constant 0 : i32
    %c0_i32_0 = arith.constant 0 : i32
    return %c0_i32, %arg0 : i32, i32
  }
}

</mosaic_0001>

<bundles_post_ra>
// kernel: tpu_custom_call.1
= control target key start
LH: loop header
LB: loop body
LE: loop exit
PB: predicated region body
PF: predicated region fallthrough
CT: control target
= control target key end

     0   :  { %vm33_vm0 = vcmask 64512   ;;  %s504_s0 = inlined_call_operand.vmem [shape: f32[8,256], index: 0, kind: input, shape index: {}]   ;;  %s505_s1 = inlined_call_operand.vmem [shape: f32[128,8], index: 1, kind: input, shape index: {}]   ;;  %s506_s2 = inlined_call_operand.vmem [shape: f32[8,128], index: 2, kind: input, shape index: {}]   ;;  %s507_s3 = inlined_call_operand.hbm [shape: f32[8,256], index: 3, kind: output, shape index: {}]  }
   0x1   :  { %v31_v0 = vld [vmem:[%s504_s0] sm:$0xff]  ;;  %v32_v1 = vld [vmem:[%s504_s0 + $0x8] sm:$0xff]  ;;  %v25_v3 = vld [vmem:[%s505_s1 + $0x50] sm:$0xff] }
   0x2   :  { %v15_v2 = vld [vmem:[%s505_s1] sm:$0xff]  ;;  %97 = vmatpush.msra.mxu0 %v31_v0  ;;  %335 = vmatpush.msra.mxu2 %v31_v0  ;;  %v24_v4 = vld [vmem:[%s505_s1 + $0x48] sm:$0xff] }
   0x3   :  { %336 = vmatpush.msra.mxu3 %v32_v1  ;;  %303 = vmatmul.msk.f32.vlgmr.msra.gmra.mxu0 %vm33_vm0, %v15_v2 }
   0x4   :  { %313 = vmatmul.msk.f32.vlgmr.msra.gmra.mxu2 %vm33_vm0, %v25_v3  ;;  %328 = vmatmul.msk.f32.vlgmr.msra.gmra.mxu3 %vm33_vm0, %v24_v4 }
   0x5   :  { %162 = vmatpush.msra.mxu1 %v32_v1 }
   0x6   :  { %8 = vsyncpa [#allocation3], 0  ;;  %319 = vmatmul.msk.f32.vlgmr.msra.gmra.mxu1 %vm33_vm0, %v15_v2  ;;  %v16_v5 = vld [vmem:[%s505_s1 + $0x8] sm:$0xff]  ;;  %v26_v6 = vld [vmem:[%s505_s1 + $0x58] sm:$0xff]  ;;  %s364_s21 = smov [#allocation2]  }
   0x7   :  { %v17_v7 = vld [vmem:[%s505_s1 + $0x10] sm:$0xff]  ;;  %v27_v8 = vld [vmem:[%s505_s1 + $0x60] sm:$0xff]  ;;  %v18_v9 = vld [vmem:[%s505_s1 + $0x18] sm:$0xff]  ;;  %s292_s0 = sshll.u32 %s364_s21, 4  ;;  %s293_s0 = int_to_ptr.vmem [resolvable:$true] %s292_s0 }
   0x8   :  { %v28_v10 = vld [vmem:[%s505_s1 + $0x68] sm:$0xff]  ;;  %v19_v11 = vld [vmem:[%s505_s1 + $0x20] sm:$0xff]  ;;  %v29_v12 = vld [vmem:[%s505_s1 + $0x70] sm:$0xff] }
   0x9   :  { %v20_v13 = vld [vmem:[%s505_s1 + $0x28] sm:$0xff]  ;;  %v30_v14 = vld [vmem:[%s505_s1 + $0x78] sm:$0xff]  ;;  %v21_v15 = vld [vmem:[%s505_s1 + $0x30] sm:$0xff] }
   0xa   :  { %v22_v16 = vld [vmem:[%s505_s1 + $0x38] sm:$0xff]  ;;  %v23_v17 = vld [vmem:[%s505_s1 + $0x40] sm:$0xff] }
   0xb   :  { %304 = vmatmul.msk.f32.gmra.mxu0 %vm33_vm0, %v16_v5 }
   0xc   :  { %314 = vmatmul.msk.f32.gmra.mxu2 %vm33_vm0, %v26_v6  ;;  %329 = vmatmul.msk.f32.gmra.mxu3 %vm33_vm0, %v25_v3 }
   0xe   :  { %320 = vmatmul.msk.f32.gmra.mxu1 %vm33_vm0, %v16_v5 }
  0x13   :  { %305 = vmatmul.msk.f32.gmra.mxu0 %vm33_vm0, %v17_v7 }
  0x14   :  { %315 = vmatmul.msk.f32.gmra.mxu2 %vm33_vm0, %v27_v8  ;;  %330 = vmatmul.msk.f32.gmra.mxu3 %vm33_vm0, %v26_v6 }
  0x16   :  { %321 = vmatmul.msk.f32.gmra.mxu1 %vm33_vm0, %v17_v7 }
  0x1b   :  { %306 = vmatmul.msk.f32.gmra.mxu0 %vm33_vm0, %v18_v9 }
  0x1c   :  { %316 = vmatmul.msk.f32.gmra.mxu2 %vm33_vm0, %v28_v10  ;;  %331 = vmatmul.msk.f32.gmra.mxu3 %vm33_vm0, %v27_v8 }
  0x1e   :  { %322 = vmatmul.msk.f32.gmra.mxu1 %vm33_vm0, %v18_v9 }
  0x23   :  { %307 = vmatmul.msk.f32.gmra.mxu0 %vm33_vm0, %v19_v11 }
  0x24   :  { %317 = vmatmul.msk.f32.gmra.mxu2 %vm33_vm0, %v29_v12  ;;  %332 = vmatmul.msk.f32.gmra.mxu3 %vm33_vm0, %v28_v10 }
  0x26   :  { %323 = vmatmul.msk.f32.gmra.mxu1 %vm33_vm0, %v19_v11 }
  0x2b   :  { %308 = vmatmul.msk.f32.gmra.mxu0 %vm33_vm0, %v20_v13 }
  0x2c   :  { %318 = vmatmul.msk.f32.gmra.mxu2 %vm33_vm0, %v30_v14  ;;  %333 = vmatmul.msk.f32.gmra.mxu3 %vm33_vm0, %v29_v12 }
  0x2e   :  { %324 = vmatmul.msk.f32.gmra.mxu1 %vm33_vm0, %v20_v13 }
  0x33   :  { %309 = vmatmul.msk.f32.gmra.mxu0 %vm33_vm0, %v21_v15 }
  0x34   :  { %334 = vmatmul.msk.f32.gmra.mxu3 %vm33_vm0, %v30_v14 }
  0x36   :  { %325 = vmatmul.msk.f32.gmra.mxu1 %vm33_vm0, %v21_v15  ;;  %v244_v15 = vld [vmem:[%s506_s2] sm:$0xff]  ;;  %s294_s2 = sshll.u32 %s507_s3, 4  ;;  %s295_s2 = int_to_ptr.hbm [resolvable:$true] %s294_s2 }
  0x3b   :  { %310 = vmatmul.msk.f32.gmra.mxu0 %vm33_vm0, %v22_v16 }
  0x3e   :  { %326 = vmatmul.msk.f32.gmra.mxu1 %vm33_vm0, %v22_v16 }
  0x43   :  { %311 = vmatmul.msk.f32.gmra.mxu0 %vm33_vm0, %v23_v17 }
  0x46   :  { %327 = vmatmul.msk.f32.gmra.mxu1 %vm33_vm0, %v23_v17 }
  0x4b   :  { %312 = vmatmul.msk.f32.gmra.mxu0 %vm33_vm0, %v24_v4 }
  0x80   :  { %v471_v18 = vpop.f32.mrf.mxu0 }
  0x83   :  { %v473_v19 = vpop.f32.mrf.mxu1 }
  0x84   :  { %v213_v14 = vmax.f32 %v473_v19, 0.0 }
  0x87   :  { %v129_v20 = vpop.f32.mrf.mxu2  ;;  %v191_v21 = vpop.f32.mrf.mxu3 }
  0x88   :  { %v475_v22 = vpop.f32.mrf.mxu0  ;;  %v232_v52 = vmax.f32 %v129_v20, 0.0  ;;  %v231_v61 = vmax.f32 %v191_v21, 0.0  ;;  %v212_v20 = vmax.f32 %v471_v18, 0.0 }
  0x89   :  { %v214_v17 = vmax.f32 %v475_v22, 0.0 }
  0x8b   :  { %v477_v23 = vpop.f32.mrf.mxu1 }
  0x8c   :  { %v215_v12 = vmax.f32 %v477_v23, 0.0 }
  0x8f   :  { %v132_v24 = vpop.f32.mrf.mxu2  ;;  %v194_v25 = vpop.f32.mrf.mxu3 }
  0x90   :  { %v479_v26 = vpop.f32.mrf.mxu0  ;;  %v234_v49 = vmax.f32 %v132_v24, 0.0  ;;  %v233_v59 = vmax.f32 %v194_v25, 0.0 }
  0x91   :  { %v216_v16 = vmax.f32 %v479_v26, 0.0 }
  0x93   :  { %v481_v27 = vpop.f32.mrf.mxu1 }
  0x94   :  { %v217_v10 = vmax.f32 %v481_v27, 0.0 }
  0x97   :  { %v135_v28 = vpop.f32.mrf.mxu2  ;;  %v197_v29 = vpop.f32.mrf.mxu3 }
  0x98   :  { %v483_v30 = vpop.f32.mrf.mxu0  ;;  %v236_v47 = vmax.f32 %v135_v28, 0.0  ;;  %v235_v57 = vmax.f32 %v197_v29, 0.0 }
  0x99   :  { %v218_v13 = vmax.f32 %v483_v30, 0.0 }
  0x9b   :  { %v485_v31 = vpop.f32.mrf.mxu1 }
  0x9c   :  { %v219_v8 = vmax.f32 %v485_v31, 0.0 }
  0x9f   :  { %v138_v32 = vpop.f32.mrf.mxu2  ;;  %v200_v33 = vpop.f32.mrf.mxu3 }
  0xa0   :  { %v487_v34 = vpop.f32.mrf.mxu0  ;;  %v238_v46 = vmax.f32 %v138_v32, 0.0  ;;  %v237_v56 = vmax.f32 %v200_v33, 0.0 }
  0xa1   :  { %v220_v11 = vmax.f32 %v487_v34, 0.0 }
  0xa3   :  { %v176_v35 = vpop.f32.mrf.mxu1 }
  0xa4   :  { %v221_v6 = vmax.f32 %v176_v35, 0.0 }
  0xa7   :  { %v141_v36 = vpop.f32.mrf.mxu2  ;;  %v203_v37 = vpop.f32.mrf.mxu3 }
  0xa8   :  { %v114_v38 = vpop.f32.mrf.mxu0  ;;  %v240_v42 = vmax.f32 %v141_v36, 0.0  ;;  %v239_v55 = vmax.f32 %v203_v37, 0.0 }
  0xa9   :  { %v222_v9 = vmax.f32 %v114_v38, 0.0 }
  0xab   :  { %v179_v39 = vpop.f32.mrf.mxu1 }
  0xac   :  { %v223_v4 = vmax.f32 %v179_v39, 0.0 }
  0xaf   :  { %v144_v40 = vpop.f32.mrf.mxu2  ;;  %v206_v41 = vpop.f32.mrf.mxu3 }
  0xb0   :  { %v242_v43 = vmax.f32 %v144_v40, 0.0  ;;  %v117_v44 = vpop.f32.mrf.mxu0  ;;  %v241_v53 = vmax.f32 %v206_v41, 0.0 }
  0xb1   :  { %v224_v7 = vmax.f32 %v117_v44, 0.0 }
  0xb2   :  { %245 = vmatpush.msrb.mxu2 %v242_v43 }
  0xb3   :  { %v182_v45 = vpop.f32.mrf.mxu1 }
  0xb4   :  { %246 = vmatpush.msrb.mxu2 %v240_v42  ;;  %v225_v2 = vmax.f32 %v182_v45, 0.0 }
  0xb6   :  { %247 = vmatpush.msrb.mxu2 %v238_v46 }
  0xb7   :  { %v209_v48 = vpop.f32.mrf.mxu3 }
  0xb8   :  { %v243_v50 = vmax.f32 %v209_v48, 0.0  ;;  %248 = vmatpush.msrb.mxu2 %v236_v47  ;;  %v120_v51 = vpop.f32.mrf.mxu0 }
  0xb9   :  { %v226_v5 = vmax.f32 %v120_v51, 0.0 }
  0xba   :  { %249 = vmatpush.msrb.mxu2 %v234_v49  ;;  %265 = vmatpush.msrb.mxu3 %v243_v50 }
  0xbb   :  { %v185_v54 = vpop.f32.mrf.mxu1 }
  0xbc   :  { %250 = vmatpush.msrb.mxu2 %v232_v52  ;;  %266 = vmatpush.msrb.mxu3 %v241_v53  ;;  %v227_v63 = vmax.f32 %v185_v54, 0.0 }
  0xbe   :  { %267 = vmatpush.msrb.mxu3 %v239_v55 }
  0xc0   :  { %268 = vmatpush.msrb.mxu3 %v237_v56  ;;  %v123_v58 = vpop.f32.mrf.mxu0 }
  0xc1   :  { %v228_v3 = vmax.f32 %v123_v58, 0.0 }
  0xc2   :  { %269 = vmatpush.msrb.mxu3 %v235_v57 }
  0xc3   :  { %v188_v60 = vpop.f32.mrf.mxu1 }
  0xc4   :  { %270 = vmatpush.msrb.mxu3 %v233_v59  ;;  %v229_v62 = vmax.f32 %v188_v60, 0.0 }
  0xc6   :  { %271 = vmatpush.msrb.mxu3 %v231_v61 }
  0xc8   :  { %272 = vmatpush.msrb.mxu3 %v229_v62  ;;  %v126_v0 = vpop.f32.mrf.mxu0 }
  0xc9   :  { %v230_v1 = vmax.f32 %v126_v0, 0.0 }
  0xca   :  { %273 = vmatpush.msrb.mxu3 %v227_v63 }
  0xcb   :  { %251 = vmatpush.msrb.mxu2 %v230_v1 }
  0xcc   :  { %274 = vmatpush.msrb.mxu3 %v225_v2 }
  0xcd   :  { %252 = vmatpush.msrb.mxu2 %v228_v3 }
  0xce   :  { %275 = vmatpush.msrb.mxu3 %v223_v4 }
  0xcf   :  { %253 = vmatpush.msrb.mxu2 %v226_v5 }
  0xd0   :  { %276 = vmatpush.msrb.mxu3 %v221_v6 }
  0xd1   :  { %254 = vmatpush.msrb.mxu2 %v224_v7 }
  0xd2   :  { %277 = vmatpush.msrb.mxu3 %v219_v8 }
  0xd3   :  { %255 = vmatpush.msrb.mxu2 %v222_v9 }
  0xd4   :  { %278 = vmatpush.msrb.mxu3 %v217_v10 }
  0xd5   :  { %256 = vmatpush.msrb.mxu2 %v220_v11 }
  0xd6   :  { %279 = vmatpush.msrb.mxu3 %v215_v12 }
  0xd7   :  { %257 = vmatpush.msrb.mxu2 %v218_v13 }
  0xd8   :  { %280 = vmatpush.msrb.mxu3 %v213_v14 }
  0xd9   :  { %258 = vmatpush.msrb.mxu2 %v216_v16  ;;  %281 = vmatmul.f32.vlgmr.msrb.gmra.mxu3 %v244_v15 }
  0xdb   :  { %259 = vmatpush.msrb.mxu2 %v214_v17 }
  0xdd   :  { %260 = vmatpush.msrb.mxu2 %v212_v20 }
  0xde   :  { %261 = vmatmul.f32.vlgmr.msrb.gmra.mxu2 %v244_v15 }
 0x15c   :  { %v282_v21 = vpop.f32.mrf.mxu3 }
 0x15d   :  { %286 = vst [vmem:[#allocation2 + $0x8] sm:$0xff] %v282_v21 }
 0x161   :  { %v262_v19 = vpop.f32.mrf.mxu2 }
 0x162   :  { %285 = vst [vmem:[#allocation2] sm:$0xff] %v262_v19 }
 0x163   :  { %297 = dma.vmem_to_hbm [thread:$0]  %s293_s0, 256, %s295_s2, [#allocation3]  }
 0x164   :  { %362 = dma.done.wait [#allocation3], 256  }
 0x165   :  { %363 = vsyncadd [#allocation3], 4294967040 }
 0x166   :  { %302 = vsyncpa [#allocation3], 1 }

</bundles_post_ra>
